<compile_context>
chip_gen: v7x
topology: tpu7x:2x2x1
jax: 0.10.0
libtpu: 0.0.40
codegen_flags: <defaults>
</compile_context>

<pallas_src>
import functools

import jax
import jax.numpy as jnp
from jax import lax
from jax.experimental import pallas as pl
from jax.experimental.pallas import tpu as pltpu


def qvalue_kernel(x_ref, a_ref, ws_ref, bs_ref, wa_ref, ba_ref,
                  w1_ref, b1_ref, w2_ref, b2_ref, out_ref):
    # fc_s (+ReLU): contract Ws (64, 7) with x (Bt, 7) over the feature axis.
    # Transposed-rhs dot_general -> Mosaic feeds x^T to the MXU in-kernel,
    # no XLA-side transpose.  Result is feature-major (64, Bt).
    hs = lax.dot_general(ws_ref[...], x_ref[...],
                         (((1,), (1,)), ((), ())),
                         preferred_element_type=jnp.float32)
    hs = jnp.maximum(hs + bs_ref[...], 0.0)

    # fc_a (+ReLU): fan_in == 1, so this is a broadcast outer product on the
    # VPU (no MXU push): wa (64, 1) * a (1, Bt) -> (64, Bt).
    ha = jnp.maximum(wa_ref[...] * a_ref[...] + ba_ref[...], 0.0)

    # concat along the sublane-aligned feature axis -> (128, Bt); replaces the
    # torch.cat layer and keeps fc1 a single K=128 contraction.
    h = jnp.concatenate([hs, ha], axis=0)

    # fc1 (+ReLU): native bf16 MXU path, f32 accumulation.
    q = jnp.dot(w1_ref[...], h.astype(jnp.bfloat16),
                preferred_element_type=jnp.float32)
    q = jnp.maximum(q + b1_ref[...], 0.0)

    # fc2 (M=1): keep it off the MXU -> VPU multiply + sublane sum (XLU),
    # lane-dense (1, Bt) store.
    out_ref[...] = jnp.sum(w2_ref[...] * q, axis=0, keepdims=True) + b2_ref[...]


def init_params(key):
    """PyTorch-native nn.Linear params: weight (out,in), bias (out,),
    U(-1/sqrt(fan_in), 1/sqrt(fan_in)) init."""
    def linear(key, fan_out, fan_in):
        kw, kb = jax.random.split(key)
        bound = 1.0 / jnp.sqrt(jnp.float32(fan_in))
        w = jax.random.uniform(kw, (fan_out, fan_in), jnp.float32, -bound, bound)
        b = jax.random.uniform(kb, (fan_out,), jnp.float32, -bound, bound)
        return w, b

    k_s, k_a, k_1, k_2 = jax.random.split(key, 4)
    ws, bs = linear(k_s, 64, 7)      # fc_s
    wa, ba = linear(k_a, 64, 1)      # fc_a
    w1, b1 = linear(k_1, 128, 128)   # fc1
    w2, b2 = linear(k_2, 1, 128)     # fc2
    return (ws, bs, wa, ba, w1, b1, w2, b2)


def pack_params(params):
    """One-time (off the hot path) repack into the kernel layout."""
    ws, bs, wa, ba, w1, b1, w2, b2 = params
    return (
        ws,                           # (64, 7)   f32   fc_s weight
        bs[:, None],                  # (64, 1)   f32
        wa,                           # (64, 1)   f32   fc_a weight (fan_in=1)
        ba[:, None],                  # (64, 1)   f32
        w1.astype(jnp.bfloat16),      # (128,128) bf16  native MXU operand
        b1[:, None],                  # (128, 1)  f32
        w2.T,                         # (128, 1)  f32   fc2 runs on the VPU
        b2[:, None],                  # (1, 1)    f32
    )


def _cdiv(a, b):
    return (a + b - 1) // b


def _round_up(a, b):
    return _cdiv(a, b) * b


@functools.partial(jax.jit, static_argnames=("b_tile",))
def qvalue_forward(x, a, packed_params, *, b_tile=2048):
    """x: (B, 7) state, a: (B, 1) action -> (B, 1) Q-value."""
    ws, bs, wa, ba, w1, b1, w2, b2 = packed_params
    B = x.shape[0]
    lanes = 128

    # Batch tile: multiple of the 128-lane width, no over-padding of tiny
    # batches, and >= 2 grid steps when there is enough work so both v7x
    # TensorCores get used under dimension_semantics=("parallel",).
    # NOTE: b_tile > ~4096 on v5e needs vmem_limit_bytes raised explicitly.
    bt = max(lanes, (b_tile // lanes) * lanes)
    bt = min(bt, _round_up(B, lanes))
    if B > 2 * lanes and _cdiv(B, bt) < 2:
        bt = _round_up(_cdiv(B, 2), lanes)
    grid = (_cdiv(B, bt),)

    # (B, 1) -> (1, B) is a free (no-copy) reshape: no transpose / concat /
    # pad of the inputs on the XLA side.
    a_row = a.reshape(1, B)

    def resident(shape):
        # weights & biases: same block every step -> stay VMEM-resident
        return pl.BlockSpec(shape, lambda i: (0, 0))

    out = pl.pallas_call(
        qvalue_kernel,
        out_shape=jax.ShapeDtypeStruct((1, B), jnp.float32),
        grid=grid,
        in_specs=[
            pl.BlockSpec((bt, 7), lambda i: (i, 0)),   # x: natural row-major
            pl.BlockSpec((1, bt), lambda i: (0, i)),   # a: lane-major row
            resident(ws.shape),  resident(bs.shape),
            resident(wa.shape),  resident(ba.shape),
            resident(w1.shape),  resident(b1.shape),
            resident(w2.shape),  resident(b2.shape),
        ],
        out_specs=pl.BlockSpec((1, bt), lambda i: (0, i)),  # lane-dense store
        compiler_params=pltpu.CompilerParams(
            dimension_semantics=("parallel",)),
    )(x, a_row, ws, bs, wa, ba, w1, b1, w2, b2)

    # (1, B) -> (B, 1) is again a free reshape back to the PyTorch layout.
    return out.reshape(B, 1)


def reference_forward(x, a, params):
    ws, bs, wa, ba, w1, b1, w2, b2 = params
    h1 = jax.nn.relu(x @ ws.T + bs)
    h2 = jax.nn.relu(a @ wa.T + ba)
    cat = jnp.concatenate([h1, h2], axis=-1)
    q = jax.nn.relu(cat @ w1.T + b1)
    return q @ w2.T + b2


if __name__ == "__main__":
    key = jax.random.PRNGKey(0)
    k_p, k_x, k_a = jax.random.split(key, 3)

    params = init_params(k_p)
    packed = pack_params(params)

    B = 8
    x = jax.random.normal(k_x, (B, 7), jnp.float32)   # state: 7 features
    a = jax.random.normal(k_a, (B, 1), jnp.float32)   # action: 1 feature

    out = qvalue_forward(x, a, packed)
    out = jax.block_until_ready(out)

    ref = reference_forward(x, a, params)
    assert out.shape == (B, 1)
    # fc1 uses bf16 operands (f32 accumulation), so compare with a bf16-level
    # tolerance against the pure-f32 reference.
    assert jnp.allclose(out, ref, atol=2e-2, rtol=2e-2), "mismatch vs JAX reference"

    print("KERNEL_OK")
</pallas_src>

<mosaic_0001>
module attributes {stable_mosaic.version = 11 : i64} {
  func.func @qvalue_kernel(%arg0: i32, %arg1: memref<128x7xf32, #tpu.memory_space<vmem>>, %arg2: memref<1x128xf32, #tpu.memory_space<vmem>>, %arg3: memref<64x7xf32, #tpu.memory_space<vmem>>, %arg4: memref<64x1xf32, #tpu.memory_space<vmem>>, %arg5: memref<64x1xf32, #tpu.memory_space<vmem>>, %arg6: memref<64x1xf32, #tpu.memory_space<vmem>>, %arg7: memref<128x128xbf16, #tpu.memory_space<vmem>>, %arg8: memref<128x1xf32, #tpu.memory_space<vmem>>, %arg9: memref<128x1xf32, #tpu.memory_space<vmem>>, %arg10: memref<1x1xf32, #tpu.memory_space<vmem>>, %arg11: memref<1x128xf32, #tpu.memory_space<vmem>>) attributes {dimension_semantics = [#tpu.dimension_semantics<parallel>], iteration_bounds = array<i64: 1>, scalar_prefetch = 0 : i64, scratch_operands = 0 : i64, tpu.core_type = #tpu.core_type<tc>, window_params = [{transform_indices = @transform_0, window_bounds = array<i64: 128, 7>}, {transform_indices = @transform_1, window_bounds = array<i64: 1, 128>}, {pipeline_mode = #tpu.pipeline_mode<synchronous>, transform_indices = @transform_2, window_bounds = array<i64: 64, 7>}, {pipeline_mode = #tpu.pipeline_mode<synchronous>, transform_indices = @transform_3, window_bounds = array<i64: 64, 1>}, {pipeline_mode = #tpu.pipeline_mode<synchronous>, transform_indices = @transform_4, window_bounds = array<i64: 64, 1>}, {pipeline_mode = #tpu.pipeline_mode<synchronous>, transform_indices = @transform_5, window_bounds = array<i64: 64, 1>}, {pipeline_mode = #tpu.pipeline_mode<synchronous>, transform_indices = @transform_6, window_bounds = array<i64: 128, 128>}, {pipeline_mode = #tpu.pipeline_mode<synchronous>, transform_indices = @transform_7, window_bounds = array<i64: 128, 1>}, {pipeline_mode = #tpu.pipeline_mode<synchronous>, transform_indices = @transform_8, window_bounds = array<i64: 128, 1>}, {pipeline_mode = #tpu.pipeline_mode<synchronous>, transform_indices = @transform_9, window_bounds = array<i64: 1, 1>}, {transform_indices = @transform_10, window_bounds = array<i64: 1, 128>}]} {
    %c0 = arith.constant 0 : index
    %c0_0 = arith.constant 0 : index
    %0 = vector.load %arg3[%c0, %c0_0] : memref<64x7xf32, #tpu.memory_space<vmem>>, vector<64x7xf32>
    %c0_1 = arith.constant 0 : index
    %c0_2 = arith.constant 0 : index
    %1 = vector.load %arg1[%c0_1, %c0_2] : memref<128x7xf32, #tpu.memory_space<vmem>>, vector<128x7xf32>
    %cst = arith.constant dense<0.000000e+00> : vector<64x128xf32>
    %2 = tpu.matmul %0, %1, %cst {dimension_numbers = #tpu.dot_dimension_numbers<[1], [1], [0], [0], [0, 0, 1, 0], [], []>} : vector<64x7xf32>, vector<128x7xf32>, vector<64x128xf32> -> vector<64x128xf32>
    %c0_3 = arith.constant 0 : index
    %c0_4 = arith.constant 0 : index
    %3 = vector.load %arg4[%c0_3, %c0_4] : memref<64x1xf32, #tpu.memory_space<vmem>>, vector<64x1xf32>
    %4 = vector.broadcast %3 : vector<64x1xf32> to vector<64x128xf32>
    %5 = arith.addf %2, %4 : vector<64x128xf32>
    %cst_5 = arith.constant 0.000000e+00 : f32
    %6 = vector.broadcast %cst_5 : f32 to vector<64x128xf32>
    %7 = arith.maximumf %5, %6 : vector<64x128xf32>
    %c0_6 = arith.constant 0 : index
    %c0_7 = arith.constant 0 : index
    %8 = vector.load %arg5[%c0_6, %c0_7] : memref<64x1xf32, #tpu.memory_space<vmem>>, vector<64x1xf32>
    %c0_8 = arith.constant 0 : index
    %c0_9 = arith.constant 0 : index
    %9 = vector.load %arg2[%c0_8, %c0_9] : memref<1x128xf32, #tpu.memory_space<vmem>>, vector<1x128xf32>
    %10 = vector.broadcast %8 : vector<64x1xf32> to vector<64x128xf32>
    %11 = vector.broadcast %9 : vector<1x128xf32> to vector<64x128xf32>
    %12 = arith.mulf %10, %11 : vector<64x128xf32>
    %c0_10 = arith.constant 0 : index
    %c0_11 = arith.constant 0 : index
    %13 = vector.load %arg6[%c0_10, %c0_11] : memref<64x1xf32, #tpu.memory_space<vmem>>, vector<64x1xf32>
    %14 = vector.broadcast %13 : vector<64x1xf32> to vector<64x128xf32>
    %15 = arith.addf %12, %14 : vector<64x128xf32>
    %cst_12 = arith.constant 0.000000e+00 : f32
    %16 = vector.broadcast %cst_12 : f32 to vector<64x128xf32>
    %17 = arith.maximumf %15, %16 : vector<64x128xf32>
    %18 = tpu.concatenate %7, %17 in 0 : vector<64x128xf32>, vector<64x128xf32> -> vector<128x128xf32>
    %c0_13 = arith.constant 0 : index
    %c0_14 = arith.constant 0 : index
    %19 = vector.load %arg7[%c0_13, %c0_14] : memref<128x128xbf16, #tpu.memory_space<vmem>>, vector<128x128xbf16>
    %20 = arith.truncf %18 : vector<128x128xf32> to vector<128x128xbf16>
    %cst_15 = arith.constant dense<0.000000e+00> : vector<128x128xf32>
    %21 = tpu.matmul %19, %20, %cst_15 {dimension_numbers = #tpu.dot_dimension_numbers<[1], [0], [0], [1], [0, 0, 1, 1], [], []>} : vector<128x128xbf16>, vector<128x128xbf16>, vector<128x128xf32> -> vector<128x128xf32>
    %c0_16 = arith.constant 0 : index
    %c0_17 = arith.constant 0 : index
    %22 = vector.load %arg8[%c0_16, %c0_17] : memref<128x1xf32, #tpu.memory_space<vmem>>, vector<128x1xf32>
    %23 = vector.broadcast %22 : vector<128x1xf32> to vector<128x128xf32>
    %24 = arith.addf %21, %23 : vector<128x128xf32>
    %cst_18 = arith.constant 0.000000e+00 : f32
    %25 = vector.broadcast %cst_18 : f32 to vector<128x128xf32>
    %26 = arith.maximumf %24, %25 : vector<128x128xf32>
    %c0_19 = arith.constant 0 : index
    %c0_20 = arith.constant 0 : index
    %27 = vector.load %arg9[%c0_19, %c0_20] : memref<128x1xf32, #tpu.memory_space<vmem>>, vector<128x1xf32>
    %28 = vector.broadcast %27 : vector<128x1xf32> to vector<128x128xf32>
    %29 = arith.mulf %28, %26 : vector<128x128xf32>
    %cst_21 = arith.constant dense<0.000000e+00> : vector<128xf32>
    %30 = vector.multi_reduction <add>, %29, %cst_21 [0] : vector<128x128xf32> to vector<128xf32>
    %31 = vector.shape_cast %30 : vector<128xf32> to vector<1x128xf32>
    %c0_22 = arith.constant 0 : index
    %c0_23 = arith.constant 0 : index
    %32 = vector.load %arg10[%c0_22, %c0_23] : memref<1x1xf32, #tpu.memory_space<vmem>>, vector<1x1xf32>
    %33 = vector.broadcast %32 : vector<1x1xf32> to vector<1x128xf32>
    %34 = arith.addf %31, %33 : vector<1x128xf32>
    %c0_24 = arith.constant 0 : index
    %c0_25 = arith.constant 0 : index
    %35 = vector.load %arg11[%c0_24, %c0_25] : memref<1x128xf32, #tpu.memory_space<vmem>>, vector<1x128xf32>
    tpu.vector_store %arg11[%c0_24, %c0_25], %34 {strides = array<i32>} : memref<1x128xf32, #tpu.memory_space<vmem>>, vector<1x128xf32>,
    return
  }
  func.func @transform_0(%arg0: i32) -> (i32, i32) {
    %c0_i32 = arith.constant 0 : i32
    %c0_i32_0 = arith.constant 0 : i32
    return %arg0, %c0_i32 : i32, i32
  }
  func.func @transform_1(%arg0: i32) -> (i32, i32) {
    %c0_i32 = arith.constant 0 : i32
    %c0_i32_0 = arith.constant 0 : i32
    return %c0_i32, %arg0 : i32, i32
  }
  func.func @transform_2(%arg0: i32) -> (i32, i32) {
    %c0_i32 = arith.constant 0 : i32
    %c0_i32_0 = arith.constant 0 : i32
    %c0_i32_1 = arith.constant 0 : i32
    return %c0_i32, %c0_i32_0 : i32, i32
  }
  func.func @transform_3(%arg0: i32) -> (i32, i32) {
    %c0_i32 = arith.constant 0 : i32
    %c0_i32_0 = arith.constant 0 : i32
    %c0_i32_1 = arith.constant 0 : i32
    return %c0_i32, %c0_i32_0 : i32, i32
  }
  func.func @transform_4(%arg0: i32) -> (i32, i32) {
    %c0_i32 = arith.constant 0 : i32
    %c0_i32_0 = arith.constant 0 : i32
    %c0_i32_1 = arith.constant 0 : i32
    return %c0_i32, %c0_i32_0 : i32, i32
  }
  func.func @transform_5(%arg0: i32) -> (i32, i32) {
    %c0_i32 = arith.constant 0 : i32
    %c0_i32_0 = arith.constant 0 : i32
    %c0_i32_1 = arith.constant 0 : i32
    return %c0_i32, %c0_i32_0 : i32, i32
  }
  func.func @transform_6(%arg0: i32) -> (i32, i32) {
    %c0_i32 = arith.constant 0 : i32
    %c0_i32_0 = arith.constant 0 : i32
    %c0_i32_1 = arith.constant 0 : i32
    return %c0_i32, %c0_i32_0 : i32, i32
  }
  func.func @transform_7(%arg0: i32) -> (i32, i32) {
    %c0_i32 = arith.constant 0 : i32
    %c0_i32_0 = arith.constant 0 : i32
    %c0_i32_1 = arith.constant 0 : i32
    return %c0_i32, %c0_i32_0 : i32, i32
  }
  func.func @transform_8(%arg0: i32) -> (i32, i32) {
    %c0_i32 = arith.constant 0 : i32
    %c0_i32_0 = arith.constant 0 : i32
    %c0_i32_1 = arith.constant 0 : i32
    return %c0_i32, %c0_i32_0 : i32, i32
  }
  func.func @transform_9(%arg0: i32) -> (i32, i32) {
    %c0_i32 = arith.constant 0 : i32
    %c0_i32_0 = arith.constant 0 : i32
    %c0_i32_1 = arith.constant 0 : i32
    return %c0_i32, %c0_i32_0 : i32, i32
  }
  func.func @transform_10(%arg0: i32) -> (i32, i32) {
    %c0_i32 = arith.constant 0 : i32
    %c0_i32_0 = arith.constant 0 : i32
    return %c0_i32, %arg0 : i32, i32
  }
}

</mosaic_0001>

<bundles_post_ra>
// kernel: qvalue_forward.1
= control target key start
LH: loop header
LB: loop body
LE: loop exit
PB: predicated region body
PF: predicated region fallthrough
CT: control target
= control target key end

     0   :  { %s1482_s0 = inlined_call_operand.vmem [shape: f32[8,7], index: 0, kind: input, shape index: {}]   ;;  %s1483_s1 = inlined_call_operand.vmem [shape: f32[1,8], index: 1, kind: input, shape index: {}]   ;;  %s1484_s2 = inlined_call_operand.vmem [shape: f32[64,7], index: 2, kind: input, shape index: {}]   ;;  %s1485_s3 = inlined_call_operand.vmem [shape: f32[64,1], index: 3, kind: input, shape index: {}]   ;;  %s1486_s4 = inlined_call_operand.vmem [shape: f32[64,1], index: 4, kind: input, shape index: {}]   ;;  %s1487_s5 = inlined_call_operand.vmem [shape: f32[64,1], index: 5, kind: input, shape index: {}]   ;;  %s1488_s6 = inlined_call_operand.vmem [shape: bf16[128,128], index: 6, kind: input, shape index: {}]   ;;  %s1489_s7 = inlined_call_operand.vmem [shape: f32[128,1], index: 7, kind: input, shape index: {}]   ;;  %s1490_s8 = inlined_call_operand.vmem [shape: f32[128,1], index: 8, kind: input, shape index: {}]   ;;  %s1491_s9 = inlined_call_operand.<no memory space> [shape: f32[1,1], index: 9, kind: input, shape index: {}]   ;;  %s1492_s10 = inlined_call_operand.hbm [shape: f32[1,8], index: 10, kind: output, shape index: {}]  }
   0x1   :  { %v15_v0 = vstv %s1491_s9 }
   0x2   :  { %16 = vst [vmem:[#allocation2] sm:$0x1] %v15_v0 }
   0x3   :  { %v47_v1 = vld [vmem:[%s1482_s0] sm:$0xff]  ;;  %v48_v2 = vld [vmem:[%s1482_s0 + $0x8] sm:$0xff]  ;;  %vm111_vm0 = vcmask 56320   ;;  %v49_v3 = vld [vmem:[%s1482_s0 + $0x10] sm:$0xff]  ;;  %v1097_v7 = vmov 0  }
   0x4   :  { %v1013_v4 = vpack.c.bf16 %v48_v2, %v47_v1  ;;  %vm1168_vm1 = vmpackc.low %vm111_vm0, %vm111_vm0  ;;  %v50_v6 = vld [vmem:[%s1482_s0 + $0x18] sm:$0xff]  ;;  %1063 = vset.pattern.permute.xlu0 %v1097_v7  ;;  %1064 = vset.pattern.permute.xlu1 %v1097_v7  ;;  %v63_v9 = vld [vmem:[%s1485_s3] sm:$0xff] }
   0x5   :  { %v1019_v8 = vpack.c.bf16 %v50_v6, %v49_v3  ;;  %73 = vperm.xlu0 %1063, %v63_v9   ;;  %v65_v10 = vld [vmem:[%s1485_s3 + $0x10] sm:$0xff]  ;;  %v64_v11 = vld [vmem:[%s1485_s3 + $0x8] sm:$0xff]  ;;  %v66_v12 = vld [vmem:[%s1485_s3 + $0x18] sm:$0xff] }
   0x6   :  { %1015 = vmatprep.subr.msk.bf16.mxu0 %vm1168_vm1, %v1013_v4  ;;  %83 = vperm.xlu1 %1064, %v65_v10   ;;  %v51_v13 = vld [vmem:[%s1482_s0 + $0x20] sm:$0xff]  ;;  %v52_v14 = vld [vmem:[%s1482_s0 + $0x28] sm:$0xff]  ;;  %v69_v18 = vld [vmem:[%s1485_s3 + $0x30] sm:$0xff] }
   0x7   :  { %1018 = vmatpush3.bf16.xpose.msk.msra.mxu0 %vm1168_vm1, %v1013_v4  ;;  %v67_v15 = vld [vmem:[%s1485_s3 + $0x20] sm:$0xff]  ;;  %v1025_v16 = vpack.c.bf16 %v52_v14, %v51_v13  ;;  %v68_v17 = vld [vmem:[%s1485_s3 + $0x28] sm:$0xff]  ;;  %v70_v20 = vld [vmem:[%s1485_s3 + $0x38] sm:$0xff] }
   0x8   :  { %1021 = vmatprep.subr.msk.bf16.mxu0 %vm1168_vm1, %v1019_v8  ;;  %v39_v19 = vld [vmem:[%s1484_s2] sm:$0xff]  ;;  %v53_v21 = vld [vmem:[%s1482_s0 + $0x30] sm:$0xff]  ;;  %v54_v22 = vld [vmem:[%s1482_s0 + $0x38] sm:$0xff] }
   0x9   :  { %78 = vperm.xlu0 %1063, %v64_v11   ;;  %969 = vmatprep.mubr.msk.f32.mxu0 %vm111_vm0, %v39_v19  ;;  %v297_v23 = vld [vmem:[%s1486_s4] sm:$0xff]  ;;  %v1031_v24 = vpack.c.bf16 %v54_v22, %v53_v21  ;;  %v298_v25 = vld [vmem:[%s1486_s4 + $0x8] sm:$0xff]  ;;  %v299_v30 = vld [vmem:[%s1486_s4 + $0x10] sm:$0xff] }
   0xa   :  { %88 = vperm.xlu1 %1064, %v66_v12   ;;  %v360_v26 = vld [vmem:[%s1487_s5] sm:$0xff]  ;;  %v361_v27 = vld [vmem:[%s1487_s5 + $0x8] sm:$0xff]  ;;  %v300_v32 = vld [vmem:[%s1486_s4 + $0x18] sm:$0xff] }
   0xb   :  { %v55_v28 = vld [vmem:[%s1482_s0 + $0x40] sm:$0xff]  ;;  %v56_v29 = vld [vmem:[%s1482_s0 + $0x48] sm:$0xff]  ;;  %v362_v33 = vld [vmem:[%s1487_s5 + $0x10] sm:$0xff] }
   0xc   :  { %v1037_v31 = vpack.c.bf16 %v56_v29, %v55_v28  ;;  %v363_v34 = vld [vmem:[%s1487_s5 + $0x18] sm:$0xff]  ;;  %v57_v35 = vld [vmem:[%s1482_s0 + $0x50] sm:$0xff]  ;;  %v301_v37 = vld [vmem:[%s1486_s4 + $0x20] sm:$0xff] }
   0xd   :  { %93 = vperm.xlu0 %1063, %v67_v15   ;;  %v58_v36 = vld [vmem:[%s1482_s0 + $0x58] sm:$0xff]  ;;  %v302_v39 = vld [vmem:[%s1486_s4 + $0x28] sm:$0xff] }
   0xe   :  { %98 = vperm.xlu1 %1064, %v68_v17   ;;  %v1043_v38 = vpack.c.bf16 %v58_v36, %v57_v35 }
   0xf   :  { %1024 = vmatpush3.bf16.xpose.msk.msra.mxu0 %vm1168_vm1, %v1019_v8 }
  0x10   :  { %1027 = vmatprep.subr.msk.bf16.mxu0 %vm1168_vm1, %v1025_v16 }
  0x11   :  { %103 = vperm.xlu0 %1063, %v69_v18  }
  0x12   :  { %108 = vperm.xlu1 %1064, %v70_v20  }
  0x15   :  { %308 = vperm.xlu0 %1063, %v297_v23  }
  0x16   :  { %313 = vperm.xlu1 %1064, %v298_v25  }
  0x17   :  { %1030 = vmatpush3.bf16.xpose.msk.msra.mxu0 %vm1168_vm1, %v1025_v16 }
  0x18   :  { %1033 = vmatprep.subr.msk.bf16.mxu0 %vm1168_vm1, %v1031_v24 }
  0x19   :  { %370 = vperm.xlu0 %1063, %v360_v26  }
  0x1a   :  { %375 = vperm.xlu1 %1064, %v361_v27  }
  0x1d   :  { %318 = vperm.xlu0 %1063, %v299_v30  }
  0x1e   :  { %323 = vperm.xlu1 %1064, %v300_v32  }
  0x1f   :  { %1036 = vmatpush3.bf16.xpose.msk.msra.mxu0 %vm1168_vm1, %v1031_v24 }
  0x20   :  { %1039 = vmatprep.subr.msk.bf16.mxu0 %vm1168_vm1, %v1037_v31 }
  0x21   :  { %380 = vperm.xlu0 %1063, %v362_v33  }
  0x22   :  { %385 = vperm.xlu1 %1064, %v363_v34  }
  0x23   :  { %17 = vsyncpa [#allocation4], 0  ;;  %v364_v40 = vld [vmem:[%s1487_s5 + $0x20] sm:$0xff]  ;;  %v365_v41 = vld [vmem:[%s1487_s5 + $0x28] sm:$0xff] }
  0x24   :  { %v59_v42 = vld [vmem:[%s1482_s0 + $0x60] sm:$0xff]  ;;  %v60_v43 = vld [vmem:[%s1482_s0 + $0x68] sm:$0xff]  ;;  %v303_v44 = vld [vmem:[%s1486_s4 + $0x30] sm:$0xff] }
  0x25   :  { %328 = vperm.xlu0 %1063, %v301_v37   ;;  %v1049_v45 = vpack.c.bf16 %v60_v43, %v59_v42  ;;  %v304_v46 = vld [vmem:[%s1486_s4 + $0x38] sm:$0xff]  ;;  %v366_v47 = vld [vmem:[%s1487_s5 + $0x30] sm:$0xff]  ;;  %v448_v51 = vld [vmem:[%s1489_s7] sm:$0xff] }
  0x26   :  { %333 = vperm.xlu1 %1064, %v302_v39   ;;  %v367_v48 = vld [vmem:[%s1487_s5 + $0x38] sm:$0xff]  ;;  %v61_v49 = vld [vmem:[%s1482_s0 + $0x70] sm:$0xff]  ;;  %v449_v53 = vld [vmem:[%s1489_s7 + $0x8] sm:$0xff] }
  0x27   :  { %1042 = vmatpush3.bf16.xpose.msk.msra.mxu0 %vm1168_vm1, %v1037_v31  ;;  %v62_v50 = vld [vmem:[%s1482_s0 + $0x78] sm:$0xff]  ;;  %v450_v54 = vld [vmem:[%s1489_s7 + $0x10] sm:$0xff]  ;;  %v452_v56 = vld [vmem:[%s1489_s7 + $0x20] sm:$0xff] }
  0x28   :  { %1045 = vmatprep.subr.msk.bf16.mxu0 %vm1168_vm1, %v1043_v38  ;;  %v1055_v52 = vpack.c.bf16 %v62_v50, %v61_v49  ;;  %v451_v55 = vld [vmem:[%s1489_s7 + $0x18] sm:$0xff]  ;;  %v705_v57 = vld [vmem:[%s1490_s8] sm:$0xff]  ;;  %v706_v58 = vld [vmem:[%s1490_s8 + $0x8] sm:$0xff] }
  0x29   :  { %390 = vperm.xlu0 %1063, %v364_v40   ;;  %v707_v59 = vld [vmem:[%s1490_s8 + $0x10] sm:$0xff]  ;;  %v40_v60 = vld [vmem:[%s1484_s2 + $0x8] sm:$0xff]  ;;  %v708_v63 = vld [vmem:[%s1490_s8 + $0x18] sm:$0xff] }
  0x2a   :  { %395 = vperm.xlu1 %1064, %v365_v41   ;;  %v453_v61 = vld [vmem:[%s1489_s7 + $0x28] sm:$0xff]  ;;  %v41_v62 = vld [vmem:[%s1484_s2 + $0x10] sm:$0xff]  ;;  %v42_v0 = vld [vmem:[%s1484_s2 + $0x18] sm:$0xff] }
  0x2b   :  { %v454_v1 = vld [vmem:[%s1489_s7 + $0x30] sm:$0xff]  ;;  %v43_v2 = vld [vmem:[%s1484_s2 + $0x20] sm:$0xff]  ;;  %v44_v4 = vld [vmem:[%s1484_s2 + $0x28] sm:$0xff] }
  0x2c   :  { %v709_v3 = vld [vmem:[%s1490_s8 + $0x20] sm:$0xff]  ;;  %v455_v5 = vld [vmem:[%s1489_s7 + $0x38] sm:$0xff]  ;;  %v45_v6 = vld [vmem:[%s1484_s2 + $0x30] sm:$0xff] }
  0x2d   :  { %338 = vperm.xlu0 %1063, %v303_v44   ;;  %v710_v7 = vld [vmem:[%s1490_s8 + $0x28] sm:$0xff]  ;;  %v46_v8 = vld [vmem:[%s1484_s2 + $0x38] sm:$0xff]  ;;  %v456_v9 = vld [vmem:[%s1489_s7 + $0x40] sm:$0xff] }
  0x2e   :  { %343 = vperm.xlu1 %1064, %v304_v46   ;;  %v711_v10 = vld [vmem:[%s1490_s8 + $0x30] sm:$0xff]  ;;  %v457_v11 = vld [vmem:[%s1489_s7 + $0x48] sm:$0xff]  ;;  %v712_v12 = vld [vmem:[%s1490_s8 + $0x38] sm:$0xff] }
  0x2f   :  { %1048 = vmatpush3.bf16.xpose.msk.msra.mxu0 %vm1168_vm1, %v1043_v38  ;;  %v458_v13 = vld [vmem:[%s1489_s7 + $0x50] sm:$0xff]  ;;  %v713_v14 = vld [vmem:[%s1490_s8 + $0x40] sm:$0xff]  ;;  %v459_v15 = vld [vmem:[%s1489_s7 + $0x58] sm:$0xff] }
  0x30   :  { %1051 = vmatprep.subr.msk.bf16.mxu0 %vm1168_vm1, %v1049_v45  ;;  %v714_v16 = vld [vmem:[%s1490_s8 + $0x48] sm:$0xff]  ;;  %v460_v17 = vld [vmem:[%s1489_s7 + $0x60] sm:$0xff]  ;;  %v715_v18 = vld [vmem:[%s1490_s8 + $0x50] sm:$0xff] }
  0x31   :  { %400 = vperm.xlu0 %1063, %v366_v47   ;;  %v461_v19 = vld [vmem:[%s1489_s7 + $0x68] sm:$0xff]  ;;  %v716_v20 = vld [vmem:[%s1490_s8 + $0x58] sm:$0xff]  ;;  %v462_v21 = vld [vmem:[%s1489_s7 + $0x70] sm:$0xff] }
  0x32   :  { %405 = vperm.xlu1 %1064, %v367_v48   ;;  %v717_v22 = vld [vmem:[%s1490_s8 + $0x60] sm:$0xff]  ;;  %v463_v23 = vld [vmem:[%s1489_s7 + $0x78] sm:$0xff]  ;;  %v718_v24 = vld [vmem:[%s1490_s8 + $0x68] sm:$0xff] }
  0x33   :  { %v719_v25 = vld [vmem:[%s1490_s8 + $0x70] sm:$0xff]  ;;  %v720_v26 = vld [vmem:[%s1490_s8 + $0x78] sm:$0xff]  ;;  %v838_v27 = vld [vmem:[#allocation2] sm:$0x1] }
  0x34   :  { %v1065_v28 = vld [vmem:[%s1488_s6] sm:$0xff]  }
  0x35   :  { %466 = vperm.xlu0 %1063, %v448_v51   ;;  %997 = vmatprep.mubr.bf16.mxu1 %v1065_v28  ;;  %v888_v49 = vld [vmem:[%s1483_s1] ss:$0 sm:$0xff] }
  0x36   :  { %471 = vperm.xlu1 %1064, %v449_v53  }
  0x37   :  { %1054 = vmatpush3.bf16.xpose.msk.msra.mxu0 %vm1168_vm1, %v1049_v45 }
  0x38   :  { %1057 = vmatprep.subr.msk.bf16.mxu0 %vm1168_vm1, %v1055_v52 }
  0x39   :  { %476 = vperm.xlu0 %1063, %v450_v54  }
  0x3a   :  { %481 = vperm.xlu1 %1064, %v451_v55  }
  0x3d   :  { %486 = vperm.xlu0 %1063, %v452_v56  }
  0x3e   :  { %723 = vperm.xlu1 %1064, %v705_v57  }
  0x3f   :  { %1060 = vmatpush3.bf16.xpose.msk.msra.mxu0 %vm1168_vm1, %v1055_v52 }
  0x41   :  { %728 = vperm.xlu0 %1063, %v706_v58  }
  0x42   :  { %733 = vperm.xlu1 %1064, %v707_v59  }
  0x45   :  { %491 = vperm.xlu0 %1063, %v453_v61  }
  0x46   :  { %970 = vmatmul.mubr.msk.f32.vlgmr.msra.gmra.mrb[0].mxu0 %vm111_vm0, %v40_v60  ;;  %738 = vperm.xlu1 %1064, %v708_v63  }
  0x47   :  { %972 = vmatprep.mubr.msk.f32.mxu0 %vm111_vm0, %v41_v62 }
  0x49   :  { %496 = vperm.xlu0 %1063, %v454_v1  }
  0x4a   :  { %973 = vmatmul.mubr.msk.f32.gmra.mrb[2].mxu0 %vm111_vm0, %v42_v0  ;;  %743 = vperm.xlu1 %1064, %v709_v3  }
  0x4b   :  { %975 = vmatprep.mubr.msk.f32.mxu0 %vm111_vm0, %v43_v2 }
  0x4d   :  { %501 = vperm.xlu0 %1063, %v455_v5  }
  0x4e   :  { %976 = vmatmul.mubr.msk.f32.gmra.mrb[4].mxu0 %vm111_vm0, %v44_v4  ;;  %748 = vperm.xlu1 %1064, %v710_v7  }
  0x4f   :  { %978 = vmatprep.mubr.msk.f32.mxu0 %vm111_vm0, %v45_v6 }
  0x51   :  { %506 = vperm.xlu0 %1063, %v456_v9  }
  0x52   :  { %979 = vmatmul.mubr.msk.f32.gmra.mrb[6].mxu0 %vm111_vm0, %v46_v8  ;;  %753 = vperm.xlu1 %1064, %v711_v10  }
  0x55   :  { %511 = vperm.xlu0 %1063, %v457_v11  }
  0x56   :  { %758 = vperm.xlu1 %1064, %v712_v12  }
  0x59   :  { %516 = vperm.xlu0 %1063, %v458_v13  }
  0x5a   :  { %763 = vperm.xlu1 %1064, %v713_v14  }
  0x5d   :  { %521 = vperm.xlu0 %1063, %v459_v15  }
  0x5e   :  { %768 = vperm.xlu1 %1064, %v714_v16  }
  0x61   :  { %526 = vperm.xlu0 %1063, %v460_v17  }
  0x62   :  { %773 = vperm.xlu1 %1064, %v715_v18  }
  0x65   :  { %531 = vperm.xlu0 %1063, %v461_v19  }
  0x66   :  { %778 = vperm.xlu1 %1064, %v716_v20  }
  0x69   :  { %536 = vperm.xlu0 %1063, %v462_v21  }
  0x6a   :  { %783 = vperm.xlu1 %1064, %v717_v22  }
  0x6d   :  { %541 = vperm.xlu0 %1063, %v463_v23  }
  0x6e   :  { %788 = vperm.xlu1 %1064, %v718_v24  }
  0x71   :  { %793 = vperm.xlu0 %1063, %v719_v25  }
  0x72   :  { %798 = vperm.xlu1 %1064, %v720_v26  }
  0x75   :  { %841 = vperm.xlu0 %1063, %v838_v27  }
  0x84   :  { %v74_v29 = vpop.permute.xlu0 %73 }
  0x85   :  { %v84_v30 = vpop.permute.xlu1 %83 }
  0x88   :  { %v79_v31 = vpop.permute.xlu0 %78 }
  0x89   :  { %v89_v32 = vpop.permute.xlu1 %88 }
  0x8c   :  { %v94_v33 = vpop.permute.xlu0 %93 }
  0x8d   :  { %v99_v34 = vpop.permute.xlu1 %98 }
  0x90   :  { %v104_v35 = vpop.permute.xlu0 %103 }
  0x91   :  { %v109_v36 = vpop.permute.xlu1 %108 }
  0x94   :  { %v309_v37 = vpop.permute.xlu0 %308 }
  0x95   :  { %v314_v38 = vpop.permute.xlu1 %313  ;;  %v352_v57 = vmul.f32 %v888_v49, %v309_v37 }
  0x96   :  { %v353_v60 = vmul.f32 %v888_v49, %v314_v38 }
  0x98   :  { %v371_v39 = vpop.permute.xlu0 %370 }
  0x99   :  { %v376_v40 = vpop.permute.xlu1 %375  ;;  %v408_v2 = vadd.f32 %v371_v39, %v352_v57 }
  0x9a   :  { %v409_v5 = vadd.f32 %v376_v40, %v353_v60 }
  0x9b   :  { %v416_v15 = vmax.f32 %v408_v2, 0.0 }
  0x9c   :  { %v319_v41 = vpop.permute.xlu0 %318  ;;  %v417_v18 = vmax.f32 %v409_v5, 0.0 }
  0x9d   :  { %v324_v42 = vpop.permute.xlu1 %323  ;;  %v354_v6 = vmul.f32 %v888_v49, %v319_v41 }
  0x9e   :  { %v355_v7 = vmul.f32 %v888_v49, %v324_v42  ;;  %v444_v28 = vpack.c.bf16 %v417_v18, %v416_v15 }
  0xa0   :  { %v381_v43 = vpop.permute.xlu0 %380 }
  0xa1   :  { %v386_v44 = vpop.permute.xlu1 %385  ;;  %v410_v19 = vadd.f32 %v381_v43, %v354_v6 }
  0xa2   :  { %v411_v20 = vadd.f32 %v386_v44, %v355_v7 }
  0xa4   :  { %v329_v51 = vpop.permute.xlu0 %328 }
  0xa5   :  { %v334_v54 = vpop.permute.xlu1 %333  ;;  %v356_v22 = vmul.f32 %v888_v49, %v329_v51  ;;  %v1071_v51 = vld [vmem:[%s1488_s6 + $0x30] sm:$0xff]  }
  0xa6   :  { %v357_v23 = vmul.f32 %v888_v49, %v334_v54 }
  0xa8   :  { %v391_v8 = vpop.permute.xlu0 %390 }
  0xa9   :  { %v396_v9 = vpop.permute.xlu1 %395 }
  0xac   :  { %v339_v25 = vpop.permute.xlu0 %338 }
  0xad   :  { %v344_v26 = vpop.permute.xlu1 %343 }
  0xb1   :  { %v406_v37 = vpop.permute.xlu1 %405 }
  0xb5   :  { %v472_v54 = vpop.permute.xlu1 %471 }
 0x119   :  { %v971_v45 = vpop.f32.mrb[0].mxu0 }
 0x11a   :  { %v256_v46 = vadd.f32 %v971_v45, %v79_v31  ;;  %v250_v47 = vpop.f32.mrb[1].mxu0  ;;  %v412_v31 = vadd.f32 %v391_v8, %v356_v22 }
 0x11b   :  { %v251_v48 = vadd.f32 %v250_v47, %v74_v29  ;;  %v418_v29 = vmax.f32 %v410_v19, 0.0  ;;  %v1067_v47 = vld [vmem:[%s1488_s6 + $0x10] sm:$0xff]  }
 0x11c   :  { %v290_v50 = vmax.f32 %v256_v46, 0.0  ;;  %v420_v38 = vmax.f32 %v412_v31, 0.0  ;;  %v1066_v46 = vld [vmem:[%s1488_s6 + $0x8] sm:$0xff]  }
 0x11d   :  { %v289_v52 = vmax.f32 %v251_v48, 0.0  ;;  %v974_v53 = vpop.f32.mrb[2].mxu0  ;;  %v1068_v48 = vld [vmem:[%s1488_s6 + $0x18] sm:$0xff]  }
 0x11e   :  { %v266_v55 = vadd.f32 %v974_v53, %v89_v32  ;;  %v260_v56 = vpop.f32.mrb[3].mxu0  ;;  %v413_v32 = vadd.f32 %v396_v9, %v357_v23 }
 0x11f   :  { %v261_v58 = vadd.f32 %v260_v56, %v84_v30  ;;  %v440_v59 = vpack.c.bf16 %v290_v50, %v289_v52  ;;  %v419_v30 = vmax.f32 %v411_v20, 0.0  ;;  %v1070_v50 = vld [vmem:[%s1488_s6 + $0x28] sm:$0xff]   ;;  %v1072_v52 = vld [vmem:[%s1488_s6 + $0x38] sm:$0xff]   ;;  %v482_v56 = vpop.permute.xlu1 %481 }
 0x120   :  { %v292_v61 = vmax.f32 %v266_v55, 0.0  ;;  %v421_v39 = vmax.f32 %v413_v32, 0.0 }
 0x121   :  { %v291_v62 = vmax.f32 %v261_v58, 0.0  ;;  %v977_v63 = vpop.f32.mrb[4].mxu0  ;;  %981 = vmatprep.subr.bf16.mxu1 %v440_v59 }
 0x122   :  { %v276_v0 = vadd.f32 %v977_v63, %v99_v34  ;;  %v270_v1 = vpop.f32.mrb[5].mxu0  ;;  %982 = vmatpush3.bf16.msra.mxu1 %v440_v59  ;;  %v359_v34 = vmul.f32 %v888_v49, %v344_v26  ;;  %v446_v42 = vpack.c.bf16 %v421_v39, %v420_v38 }
 0x123   :  { %v441_v3 = vpack.c.bf16 %v292_v61, %v291_v62  ;;  %v271_v4 = vadd.f32 %v270_v1, %v94_v33  ;;  %v358_v33 = vmul.f32 %v888_v49, %v339_v25  ;;  %v1069_v49 = vld [vmem:[%s1488_s6 + $0x20] sm:$0xff]   ;;  %v724_v58 = vpop.permute.xlu1 %723  ;;  %s1098_s6 = smov [#allocation3]  }
 0x124   :  { %v294_v10 = vmax.f32 %v276_v0, 0.0  ;;  %v415_v41 = vadd.f32 %v406_v37, %v359_v34  ;;  %s856_s22 = sshll.u32 %s1098_s6, 4  ;;  %s857_s22 = int_to_ptr.vmem [resolvable:$true] %s856_s22 }
 0x125   :  { %v293_v11 = vmax.f32 %v271_v4, 0.0  ;;  %v980_v12 = vpop.f32.mrb[6].mxu0  ;;  %983 = vmatprep.subr.bf16.mxu1 %v441_v3  ;;  %s1073_s23 = scalar_lea.vmem %s857_s22, 16  ;;  %s1077_s24 = scalar_lea.vmem %s857_s22, 32 }
 0x126   :  { %v286_v13 = vadd.f32 %v980_v12, %v109_v36  ;;  %v280_v14 = vpop.f32.mrb[7].mxu0  ;;  %984 = vmatpush3.bf16.msra.mxu1 %v441_v3  ;;  %v401_v36 = vpop.permute.xlu0 %400  ;;  %v423_v44 = vmax.f32 %v415_v41, 0.0  ;;  %p1074_p0 = scmp.ne.s32.totalorder %s857_s22, %s1073_s23  ;;  %p1078_p1 = scmp.lt.s32.totalorder %s857_s22, %s857_s22 }
 0x127   :  { %v442_v16 = vpack.c.bf16 %v294_v10, %v293_v11  ;;  %v281_v17 = vadd.f32 %v280_v14, %v104_v35  ;;  %v445_v35 = vpack.c.bf16 %v419_v30, %v418_v29  ;;  %v414_v40 = vadd.f32 %v401_v36, %v358_v33  ;;  %v734_v60 = vpop.permute.xlu1 %733  ;;  %p1079_p2 = scmp.lt.s32.totalorder %s1077_s24, %s1073_s23 }
 0x128   :  { %v296_v21 = vmax.f32 %v286_v13, 0.0 }
 0x129   :  { %v295_v24 = vmax.f32 %v281_v17, 0.0  ;;  %985 = vmatprep.subr.bf16.mxu1 %v442_v16  ;;  %v422_v43 = vmax.f32 %v414_v40, 0.0  ;;  %p1080_p3 = por %p1079_p2, %p1078_p1 }
 0x12a   :  { %986 = vmatpush3.bf16.msra.mxu1 %v442_v16  ;;  %v467_v53 = vpop.permute.xlu0 %466 }
 0x12b   :  { %v443_v27 = vpack.c.bf16 %v296_v21, %v295_v24  ;;  %v447_v45 = vpack.c.bf16 %v423_v44, %v422_v43  ;;  %v739_v62 = vpop.permute.xlu1 %738  ;;  %p1081_p4 = pnand %p1080_p3, %p1074_p0 }
 0x12d   :  { %987 = vmatprep.subr.bf16.mxu1 %v443_v27 }
 0x12e   :  { %988 = vmatpush3.bf16.msra.mxu1 %v443_v27  ;;  %v477_v55 = vpop.permute.xlu0 %476 }
 0x12f   :  { %989 = vmatprep.subr.bf16.mxu1 %v444_v28  ;;  %v744_v0 = vpop.permute.xlu1 %743 }
 0x132   :  { %990 = vmatpush3.bf16.msra.mxu1 %v444_v28  ;;  %v487_v57 = vpop.permute.xlu0 %486 }
 0x133   :  { %991 = vmatprep.subr.bf16.mxu1 %v445_v35  ;;  %v749_v2 = vpop.permute.xlu1 %748 }
 0x136   :  { %992 = vmatpush3.bf16.msra.mxu1 %v445_v35  ;;  %v729_v59 = vpop.permute.xlu0 %728 }
 0x137   :  { %993 = vmatprep.subr.bf16.mxu1 %v446_v42  ;;  %v754_v4 = vpop.permute.xlu1 %753 }
 0x13a   :  { %994 = vmatpush3.bf16.msra.mxu1 %v446_v42  ;;  %v492_v61 = vpop.permute.xlu0 %491 }
 0x13b   :  { %995 = vmatprep.subr.bf16.mxu1 %v447_v45  ;;  %v759_v6 = vpop.permute.xlu1 %758 }
 0x13e   :  { %996 = vmatpush3.bf16.msra.mxu1 %v447_v45  ;;  %v497_v63 = vpop.permute.xlu0 %496 }
 0x13f   :  { %v764_v8 = vpop.permute.xlu1 %763 }
 0x141   :  { %998 = vmatmul.mubr.bf16.vlgmr.msra.gmra.mrb[0].mxu1 %v1066_v46 }
 0x142   :  { %1001 = vmatprep.mubr.bf16.mxu1 %v1067_v47  ;;  %v502_v1 = vpop.permute.xlu0 %501 }
 0x143   :  { %v769_v19 = vpop.permute.xlu1 %768 }
 0x146   :  { %v507_v3 = vpop.permute.xlu0 %506 }
 0x147   :  { %v774_v33 = vpop.permute.xlu1 %773 }
 0x149   :  { %1002 = vmatmul.mubr.bf16.gmra.mrb[4].mxu1 %v1068_v48 }
 0x14a   :  { %1005 = vmatprep.mubr.bf16.mxu1 %v1069_v49  ;;  %v512_v5 = vpop.permute.xlu0 %511 }
 0x14b   :  { %v779_v49 = vpop.permute.xlu1 %778 }
 0x14e   :  { %v517_v7 = vpop.permute.xlu0 %516 }
 0x151   :  { %1006 = vmatmul.mubr.bf16.gmra.mrb[8].mxu1 %v1070_v50 }
 0x152   :  { %1009 = vmatprep.mubr.bf16.mxu1 %v1071_v51  ;;  %v522_v14 = vpop.permute.xlu0 %521 }
 0x156   :  { %v527_v26 = vpop.permute.xlu0 %526 }
 0x159   :  { %1010 = vmatmul.mubr.bf16.gmra.mrb[12].mxu1 %v1072_v52 }
 0x15a   :  { %v532_v44 = vpop.permute.xlu0 %531 }
 0x214   :  { %v999_v9 = vpop.f32.mrb[0].mxu1 }
 0x215   :  { %v626_v10 = vpop.f32.mrb[1].mxu1  ;;  %v635_v11 = vadd.f32 %v999_v9, %v477_v55 }
 0x216   :  { %v627_v12 = vadd.f32 %v626_v10, %v467_v53  ;;  %v1000_v13 = vpop.f32.mrb[2].mxu1 }
 0x217   :  { %v638_v15 = vadd.f32 %v1000_v13, %v482_v56  ;;  %v629_v16 = vpop.f32.mrb[3].mxu1  ;;  %v691_v20 = vmax.f32 %v635_v11, 0.0 }
 0x218   :  { %v689_v17 = vmax.f32 %v627_v12, 0.0  ;;  %v630_v18 = vadd.f32 %v629_v16, %v472_v54 }
 0x219   :  { %v692_v22 = vmax.f32 %v638_v15, 0.0  ;;  %v803_v28 = vmul.f32 %v734_v60, %v691_v20 }
 0x21a   :  { %v690_v21 = vmax.f32 %v630_v18, 0.0  ;;  %v801_v23 = vmul.f32 %v724_v58, %v689_v17 }
 0x21b   :  { %v804_v34 = vmul.f32 %v739_v62, %v692_v22  ;;  %v537_v62 = vpop.permute.xlu0 %536 }
 0x21c   :  { %v802_v24 = vmul.f32 %v729_v59, %v690_v21  ;;  %v1003_v25 = vpop.f32.mrb[4].mxu1 }
 0x21d   :  { %v642_v27 = vpop.f32.mrb[5].mxu1  ;;  %v651_v30 = vadd.f32 %v1003_v25, %v497_v63 }
 0x21e   :  { %v817_v29 = vadd.f32 %v802_v24, %v801_v23  ;;  %v643_v31 = vadd.f32 %v642_v27, %v487_v57  ;;  %v1004_v32 = vpop.f32.mrb[6].mxu1 }
 0x21f   :  { %v645_v35 = vpop.f32.mrb[7].mxu1  ;;  %v654_v38 = vadd.f32 %v1004_v32, %v502_v1  ;;  %v695_v40 = vmax.f32 %v651_v30, 0.0 }
 0x220   :  { %v818_v36 = vadd.f32 %v817_v29, %v803_v28  ;;  %v693_v37 = vmax.f32 %v643_v31, 0.0  ;;  %v646_v39 = vadd.f32 %v645_v35, %v492_v61  ;;  %v844_v35 = vlaneseq }
 0x221   :  { %v696_v46 = vmax.f32 %v654_v38, 0.0  ;;  %v807_v51 = vmul.f32 %v754_v4, %v695_v40 }
 0x222   :  { %v805_v41 = vmul.f32 %v744_v0, %v693_v37  ;;  %v819_v42 = vadd.f32 %v818_v36, %v804_v34  ;;  %v694_v43 = vmax.f32 %v646_v39, 0.0  ;;  %v845_v38 = vshrl.u32 %v844_v35, 7 }
 0x223   :  { %v808_v58 = vmul.f32 %v759_v6, %v696_v46  ;;  %v542_v6 = vpop.permute.xlu0 %541 }
 0x224   :  { %v820_v45 = vadd.f32 %v819_v42, %v805_v41  ;;  %v806_v47 = vmul.f32 %v749_v2, %v694_v43  ;;  %v1007_v48 = vpop.f32.mrb[8].mxu1  ;;  %v784_v2 = vpop.permute.xlu1 %783  ;;  %v846_v41 = vsub.s32 0, %v845_v38 }
 0x225   :  { %v658_v50 = vpop.f32.mrb[9].mxu1  ;;  %v667_v53 = vadd.f32 %v1007_v48, %v517_v7 }
 0x226   :  { %v821_v52 = vadd.f32 %v820_v45, %v806_v47  ;;  %v659_v54 = vadd.f32 %v658_v50, %v507_v3  ;;  %v1008_v55 = vpop.f32.mrb[10].mxu1 }
 0x227   :  { %v670_v56 = vadd.f32 %v1008_v55, %v522_v14  ;;  %v661_v57 = vpop.f32.mrb[11].mxu1  ;;  %v699_v63 = vmax.f32 %v667_v53, 0.0  ;;  %v794_v30 = vpop.permute.xlu0 %793 }
 0x228   :  { %v822_v59 = vadd.f32 %v821_v52, %v807_v51  ;;  %v697_v60 = vmax.f32 %v659_v54, 0.0  ;;  %v662_v61 = vadd.f32 %v661_v57, %v512_v5  ;;  %v789_v22 = vpop.permute.xlu1 %788 }
 0x229   :  { %v700_v10 = vmax.f32 %v670_v56, 0.0  ;;  %v811_v7 = vmul.f32 %v774_v33, %v699_v63 }
 0x22a   :  { %v809_v0 = vmul.f32 %v764_v8, %v697_v60  ;;  %v823_v1 = vadd.f32 %v822_v59, %v808_v58  ;;  %v698_v9 = vmax.f32 %v662_v61, 0.0 }
 0x22b   :  { %v812_v17 = vmul.f32 %v779_v49, %v700_v10  ;;  %v842_v43 = vpop.permute.xlu0 %841 }
 0x22c   :  { %v824_v11 = vadd.f32 %v823_v1, %v809_v0  ;;  %v810_v12 = vmul.f32 %v769_v19, %v698_v9  ;;  %v1011_v4 = vpop.f32.mrb[12].mxu1  ;;  %v847_v45 = vrot.slane %v842_v43, %v846_v41 }
 0x22d   :  { %v674_v13 = vpop.f32.mrb[13].mxu1  ;;  %v683_v15 = vadd.f32 %v1011_v4, %v537_v62 }
 0x22e   :  { %v825_v3 = vadd.f32 %v824_v11, %v810_v12  ;;  %v675_v14 = vadd.f32 %v674_v13, %v527_v26  ;;  %v1012_v16 = vpop.f32.mrb[14].mxu1  ;;  %v799_v26 = vpop.permute.xlu1 %798 }
 0x22f   :  { %v677_v18 = vpop.f32.mrb[15].mxu1  ;;  %v686_v21 = vadd.f32 %v1012_v16, %v542_v6  ;;  %v703_v23 = vmax.f32 %v683_v15, 0.0 }
 0x230   :  { %v826_v5 = vadd.f32 %v825_v3, %v811_v7  ;;  %v701_v20 = vmax.f32 %v675_v14, 0.0  ;;  %v678_v8 = vadd.f32 %v677_v18, %v532_v44 }
 0x231   :  { %v704_v28 = vmax.f32 %v686_v21, 0.0  ;;  %v815_v31 = vmul.f32 %v794_v30, %v703_v23 }
 0x232   :  { %v813_v24 = vmul.f32 %v784_v2, %v701_v20  ;;  %v827_v25 = vadd.f32 %v826_v5, %v812_v17  ;;  %v702_v27 = vmax.f32 %v678_v8, 0.0 }
 0x233   :  { %v816_v33 = vmul.f32 %v799_v26, %v704_v28 }
 0x234   :  { %v828_v19 = vadd.f32 %v827_v25, %v813_v24  ;;  %v814_v29 = vmul.f32 %v789_v22, %v702_v27 }
 0x236   :  { %v829_v32 = vadd.f32 %v828_v19, %v814_v29 }
 0x238   :  { %v830_v34 = vadd.f32 %v829_v32, %v815_v31 }
 0x23a   :  { %v831_v36 = vadd.f32 %v830_v34, %v816_v33 }
 0x23c   :  { %v832_v37 = vrot.slane %v831_v36, 4 }
 0x23e   :  { %v833_v39 = vadd.f32 %v832_v37, %v831_v36 }
 0x240   :  { %v834_v40 = vrot.slane %v833_v39, 2 }
 0x242   :  { %v835_v42 = vadd.f32 %v834_v40, %v833_v39 }
 0x244   :  { %v836_v44 = vrot.slane %v835_v42, 1 }
 0x246   :  { %v837_v46 = vadd.f32 %v836_v44, %v835_v42 }
 0x248   :  { %v848_v47 = vadd.f32 %v847_v45, %v837_v46 }
 0x24a   :  { %849 = vst [vmem:[#allocation3] sm:$0x1] %v848_v47 }
 0x24b   :  { %1084 = shalt.err (!%p1081_p4)
}
 0x24c   :  { %s1085_s27 = scalar_lea.hbm %s1492_s10, 16 }
 0x24d   :  { %p1086_p5 = scmp.ne.s32.totalorder %s1492_s10, %s1085_s27  ;;  %p1089_p6 = scmp.lt.u32.totalorder %s1085_s27, %s1492_s10 }
 0x24f   :  { %p1091_p7 = pnand %p1089_p6, %p1086_p5 }
 0x251   :  { %1094 = shalt.err (!%p1091_p7)
}
 0x252   :  { %859 = dma.vmem_to_hbm [thread:$0]  %s857_s22, 16, %s1492_s10, [#allocation4]  }
 0x253   :  { %1095 = dma.done.wait [#allocation4], 16  }
 0x254   :  { %1096 = vsyncadd [#allocation4], 4294967280 }
 0x255   :  { %863 = vsyncpa [#allocation4], 1 }

</bundles_post_ra>
